<compile_context>
chip_gen: v6e
topology: v6e:2x2x1
jax: 0.10.0
libtpu: 0.0.40
codegen_flags: <defaults>
</compile_context>

<pallas_src>
import functools

import jax
import jax.numpy as jnp
from jax import lax
from jax.experimental import pallas as pl
from jax.experimental.pallas import tpu as pltpu


def _round_up(v: int, m: int) -> int:
    return (v + m - 1) // m * m


def _pick_row_tile(req: int, n128: int, max_waste: float = 0.25) -> int:
    """Largest multiple of 128 <= req whose padding of n128 stays within max_waste."""
    t = max(128, (min(req, n128) // 128) * 128)
    while t > 128 and _round_up(n128, t) > (1.0 + max_waste) * n128:
        t -= 128
    return t


# ---------------------------------------------------------------------------
# Stage 1: feature projection  h_src = alpha     * d_in^-1/2  * (x @ W_src^T)
#                              h_dst = (1-alpha) * d_out^-1/2 * (x @ W_dst^T)
# (alpha folded here so the stage-2 epilogue has no extra VPU multiplies)
# ---------------------------------------------------------------------------
def _project_kernel(x_ref, ws_ref, wd_ref, din_ref, dout_ref, hs_ref, hd_ref,
                    *, alpha):
    x = x_ref[...]                                            # bf16
    hs = jnp.dot(x, ws_ref[...], preferred_element_type=jnp.float32)
    hd = jnp.dot(x, wd_ref[...], preferred_element_type=jnp.float32)
    # Degree pre-scale in f32; cast to bf16 only right before the big dots.
    hs_ref[...] = ((alpha * din_ref[...]) * hs).astype(hs_ref.dtype)
    hd_ref[...] = (((1.0 - alpha) * dout_ref[...]) * hd).astype(hd_ref.dtype)


# ---------------------------------------------------------------------------
# Stage 2: fused two-direction neighborhood aggregation + blend + bias
# ---------------------------------------------------------------------------
def _dir_gcn_agg_kernel(a_ref, at_ref, hs_ref, hd_ref, dout_ref, din_ref,
                        bias_ref, out_ref, acc_s_ref, acc_d_ref):
    """Grid = (i: node-row blocks, j: F_out blocks, k: neighbor blocks), k last.

      acc_s[i,j] += A[i,k]   @ h_src[k,j]        (src -> dst)
      acc_d[i,j] += A[k,i]^T @ h_dst[k,j]        (dst -> src, via dim-0 contraction)

    Epilogue (k == last):  out = d_out^-1/2[i]*acc_s + d_in^-1/2[i]*acc_d + bias
    (alpha already folded into acc_s/acc_d via the stage-1 pre-scale; bias is
    pre-blended in the wrapper.)
    """
    k = pl.program_id(2)

    @pl.when(k == 0)
    def _init():
        acc_s_ref[...] = jnp.zeros_like(acc_s_ref)
        acc_d_ref[...] = jnp.zeros_like(acc_d_ref)

    acc_s_ref[...] += jnp.dot(a_ref[...], hs_ref[...],
                              preferred_element_type=jnp.float32)
    # NOTE(perf): verify in the Mosaic/bundle dump that this dim-0 contraction
    # lowers as a transposed-LHS MXU matmul and NOT an in-loop vxpose of the
    # (tk, tm) tile; if a vxpose shows up, pre-materialize adj.T once in HBM
    # and feed a plain (tm, tk) tile here instead.
    acc_d_ref[...] += lax.dot_general(
        at_ref[...], hd_ref[...],
        dimension_numbers=(((0,), (0,)), ((), ())),
        preferred_element_type=jnp.float32)

    @pl.when(k == pl.num_programs(2) - 1)
    def _finalize():
        out_ref[...] = (dout_ref[...] * acc_s_ref[...]
                        + din_ref[...] * acc_d_ref[...]
                        + bias_ref[...]).astype(out_ref.dtype)


# ---------------------------------------------------------------------------
# Wrapper
# ---------------------------------------------------------------------------
def dir_gcn_conv(x, adj, w_src, b_src, w_dst, b_dst, alpha,
                 *, tm=512, tn=None, tk=None):
    """DirGCNConv forward with a dense adjacency.

    x      : [N, F_in]       float
    adj    : [N, N]          float (0/1), adj[src, dst] = 1 per edge
    w_src  : [F_out, F_in]   (PyTorch Linear weight layout)
    b_src  : [F_out]
    w_dst  : [F_out, F_in]
    b_dst  : [F_out]
    """
    n, f_in = x.shape
    f_out = w_src.shape[0]
    alpha = float(alpha)

    # ---- degrees + guarded inverse sqrt (single reduction each, no f32 copy) --
    in_deg = jnp.sum(adj, axis=0, dtype=jnp.float32)      # column sums (dim=0)
    out_deg = jnp.sum(adj, axis=1, dtype=jnp.float32)     # row sums    (dim=1)
    din_is = jnp.where(in_deg > 0, lax.rsqrt(in_deg), 0.0)
    dout_is = jnp.where(out_deg > 0, lax.rsqrt(out_deg), 0.0)

    # ---- tile sizes & padding (lane-dense, (8,128)-aligned, minimal waste) ----
    n128 = _round_up(n, 128)
    tm = _pick_row_tile(tm, n128)
    np_ = _round_up(n128, tm)
    # Keep >= 2 blocks on the leading "parallel" axis when it costs no extra
    # padding (v7x has 2 TensorCores; v5e/v6e unaffected).
    if np_ // tm < 2 and tm % 256 == 0:
        tm //= 2
    if tk is None:
        tk = tm                                   # tk == tm -> no lcm over-padding
    else:
        tk = max(128, (min(tk, np_) // 128) * 128)
        while np_ % tk:
            tk -= 128

    fop = _round_up(f_out, 128)
    if tn is None:
        # Collapse the j axis whenever possible so A / A^T stream exactly once.
        if fop <= 512:
            tn = fop
        elif fop % 512 == 0:
            tn = 512
        elif fop % 256 == 0:
            tn = 256
        else:
            tn = 128
    else:
        tn = max(128, (min(tn, fop) // 128) * 128)
        while fop % tn:
            tn -= 128

    # ---- padded operands (cast fused into the single pad pass) ---------------
    x_p = jnp.pad(x.astype(jnp.bfloat16), ((0, np_ - n), (0, 0)))
    adj_bf16 = jnp.pad(adj.astype(jnp.bfloat16), ((0, np_ - n), (0, np_ - n)))
    din_p = jnp.pad(din_is, (0, np_ - n)).reshape(np_, 1).astype(jnp.float32)
    dout_p = jnp.pad(dout_is, (0, np_ - n)).reshape(np_, 1).astype(jnp.float32)
    ws_p = jnp.pad(jnp.transpose(w_src).astype(jnp.bfloat16),
                   ((0, 0), (0, fop - f_out)))                     # [F_in, Fop]
    wd_p = jnp.pad(jnp.transpose(w_dst).astype(jnp.bfloat16),
                   ((0, 0), (0, fop - f_out)))
    bias_blend = (alpha * b_src.astype(jnp.float32)
                  + (1.0 - alpha) * b_dst.astype(jnp.float32))
    bias_p = jnp.pad(bias_blend, (0, fop - f_out)).reshape(1, fop)

    # ---- stage 1: bf16 projection + alpha-folded degree pre-scale -------------
    proj = functools.partial(_project_kernel, alpha=alpha)
    hs, hd = pl.pallas_call(
        proj,
        out_shape=(jax.ShapeDtypeStruct((np_, fop), jnp.bfloat16),
                   jax.ShapeDtypeStruct((np_, fop), jnp.bfloat16)),
        grid_spec=pltpu.PrefetchScalarGridSpec(
            num_scalar_prefetch=0,
            grid=(np_ // tm,),
            in_specs=[
                pl.BlockSpec((tm, f_in), lambda i: (i, 0)),
                pl.BlockSpec((f_in, fop), lambda i: (0, 0)),
                pl.BlockSpec((f_in, fop), lambda i: (0, 0)),
                pl.BlockSpec((tm, 1), lambda i: (i, 0)),
                pl.BlockSpec((tm, 1), lambda i: (i, 0)),
            ],
            out_specs=(
                pl.BlockSpec((tm, fop), lambda i: (i, 0)),
                pl.BlockSpec((tm, fop), lambda i: (i, 0)),
            ),
        ),
        compiler_params=pltpu.CompilerParams(
            dimension_semantics=("parallel",)),
    )(x_p, ws_p, wd_p, din_p, dout_p)

    # ---- stage 2: fused aggregation over both directions ----------------------
    # Conservative VMEM estimate (double-buffered tiles + f32 accumulators);
    # explicit limit with headroom (v5e scoped default is only 16 MiB), kept
    # well under v7x's 64 MiB physical VMEM.
    vmem_est = (2 * tm * tk * 2 * 2          # A[i,k] + A[k,i] bf16 tiles
                + 2 * tk * tn * 2 * 2        # h_src, h_dst bf16 tiles
                + tm * tn * 4 * 2            # output tile (f32)
                + 2 * tm * tn * 4            # accumulators
                + 2 * tm * 4 * 2 + tn * 4 * 2)
    vmem_limit = int(min(max(1.5 * vmem_est, 16 * 2**20), 56 * 2**20))

    out_p = pl.pallas_call(
        _dir_gcn_agg_kernel,
        out_shape=jax.ShapeDtypeStruct((np_, fop), jnp.float32),
        grid_spec=pltpu.PrefetchScalarGridSpec(
            num_scalar_prefetch=0,
            grid=(np_ // tm, fop // tn, np_ // tk),
            in_specs=[
                pl.BlockSpec((tm, tk), lambda i, j, k: (i, k)),   # A[i, k]
                pl.BlockSpec((tk, tm), lambda i, j, k: (k, i)),   # A[k, i] (A^T tile)
                pl.BlockSpec((tk, tn), lambda i, j, k: (k, j)),   # h_src (pre-scaled)
                pl.BlockSpec((tk, tn), lambda i, j, k: (k, j)),   # h_dst (pre-scaled)
                pl.BlockSpec((tm, 1), lambda i, j, k: (i, 0)),    # d_out^-1/2 rows
                pl.BlockSpec((tm, 1), lambda i, j, k: (i, 0)),    # d_in^-1/2 rows
                pl.BlockSpec((1, tn), lambda i, j, k: (0, j)),    # blended bias
            ],
            out_specs=pl.BlockSpec((tm, tn), lambda i, j, k: (i, j)),
            scratch_shapes=[pltpu.VMEM((tm, tn), jnp.float32),
                            pltpu.VMEM((tm, tn), jnp.float32)],
        ),
        compiler_params=pltpu.CompilerParams(
            dimension_semantics=("parallel", "parallel", "arbitrary"),
            vmem_limit_bytes=vmem_limit),
        # NOTE(perf, conditional): if xprof shows exposed DMA on the A^T stream
        # (most likely on v5e), add pipeline_mode=pl.Buffered(3) to that spec.
    )(adj_bf16, adj_bf16, hs, hd, dout_p, din_p, bias_p)

    return out_p[:n, :f_out]


# ---------------------------------------------------------------------------
# Pure-JAX reference (mirrors the PyTorch module math)
# ---------------------------------------------------------------------------
def _reference(x, adj, w_src, b_src, w_dst, b_dst, alpha):
    in_deg = jnp.sum(adj, axis=0)
    out_deg = jnp.sum(adj, axis=1)
    din_is = jnp.where(in_deg > 0, lax.rsqrt(in_deg), 0.0)
    dout_is = jnp.where(out_deg > 0, lax.rsqrt(out_deg), 0.0)
    a_norm = dout_is[:, None] * adj * din_is[None, :]
    a_t_norm = a_norm.T        # directed_norm(A^T) == directed_norm(A)^T
    y_src = (a_norm @ x) @ w_src.T + b_src
    y_dst = (a_t_norm @ x) @ w_dst.T + b_dst
    return alpha * y_src + (1.0 - alpha) * y_dst


if __name__ == "__main__":
    key = jax.random.PRNGKey(0)
    k_x, k_a, k_ws, k_bs, k_wd, k_bd = jax.random.split(key, 6)

    N, F_IN, F_OUT = 200, 256, 64
    ALPHA = 0.7

    x = jax.random.normal(k_x, (N, F_IN), dtype=jnp.float32)
    # Sparse-ish random directed 0/1 adjacency; force a zero out-degree row and
    # a zero in-degree column to exercise the inf -> 0 degree guard.
    adj = (jax.random.uniform(k_a, (N, N)) < 0.05).astype(jnp.float32)
    adj = adj.at[0, :].set(0.0)
    adj = adj.at[:, 1].set(0.0)

    bound = 1.0 / (F_IN ** 0.5)
    w_src = jax.random.uniform(k_ws, (F_OUT, F_IN), minval=-bound, maxval=bound)
    b_src = jax.random.uniform(k_bs, (F_OUT,), minval=-bound, maxval=bound)
    w_dst = jax.random.uniform(k_wd, (F_OUT, F_IN), minval=-bound, maxval=bound)
    b_dst = jax.random.uniform(k_bd, (F_OUT,), minval=-bound, maxval=bound)

    # Default tile logic clamps/halves tm for this small graph, so the k axis
    # (neighbor accumulation) and the parallel row axis both have 2 blocks.
    out = dir_gcn_conv(x, adj, w_src, b_src, w_dst, b_dst, ALPHA)
    out = jax.block_until_ready(out)

    ref = _reference(x, adj, w_src, b_src, w_dst, b_dst, ALPHA)
    assert out.shape == ref.shape == (N, F_OUT)
    max_err = float(jnp.max(jnp.abs(out - ref)))
    if not bool(jnp.allclose(out, ref, atol=5e-2, rtol=5e-2)):
        raise AssertionError(f"mismatch vs reference, max abs err = {max_err}")
    print("KERNEL_OK")
</pallas_src>

<mosaic_0001>
module attributes {stable_mosaic.version = 11 : i64} {
  func.func @_project_kernel(%arg0: i32, %arg1: memref<128x256xbf16, #tpu.memory_space<vmem>>, %arg2: memref<256x128xbf16, #tpu.memory_space<vmem>>, %arg3: memref<256x128xbf16, #tpu.memory_space<vmem>>, %arg4: memref<128x1xf32, #tpu.memory_space<vmem>>, %arg5: memref<128x1xf32, #tpu.memory_space<vmem>>, %arg6: memref<128x128xbf16, #tpu.memory_space<vmem>>, %arg7: memref<128x128xbf16, #tpu.memory_space<vmem>>) attributes {dimension_semantics = [#tpu.dimension_semantics<parallel>], iteration_bounds = array<i64: 2>, scalar_prefetch = 0 : i64, scratch_operands = 0 : i64, tpu.core_type = #tpu.core_type<tc>, window_params = [{transform_indices = @transform_0, window_bounds = array<i64: 128, 256>}, {pipeline_mode = #tpu.pipeline_mode<synchronous>, transform_indices = @transform_1, window_bounds = array<i64: 256, 128>}, {pipeline_mode = #tpu.pipeline_mode<synchronous>, transform_indices = @transform_2, window_bounds = array<i64: 256, 128>}, {transform_indices = @transform_3, window_bounds = array<i64: 128, 1>}, {transform_indices = @transform_4, window_bounds = array<i64: 128, 1>}, {transform_indices = @transform_5, window_bounds = array<i64: 128, 128>}, {transform_indices = @transform_6, window_bounds = array<i64: 128, 128>}]} {
    %c0 = arith.constant 0 : index
    %c0_0 = arith.constant 0 : index
    %0 = vector.load %arg1[%c0, %c0_0] : memref<128x256xbf16, #tpu.memory_space<vmem>>, vector<128x256xbf16>
    %c0_1 = arith.constant 0 : index
    %c0_2 = arith.constant 0 : index
    %1 = vector.load %arg2[%c0_1, %c0_2] : memref<256x128xbf16, #tpu.memory_space<vmem>>, vector<256x128xbf16>
    %cst = arith.constant dense<0.000000e+00> : vector<128x128xf32>
    %2 = tpu.matmul %0, %1, %cst {dimension_numbers = #tpu.dot_dimension_numbers<[1], [0], [0], [1], [0, 0, 1, 1], [], []>} : vector<128x256xbf16>, vector<256x128xbf16>, vector<128x128xf32> -> vector<128x128xf32>
    %c0_3 = arith.constant 0 : index
    %c0_4 = arith.constant 0 : index
    %3 = vector.load %arg3[%c0_3, %c0_4] : memref<256x128xbf16, #tpu.memory_space<vmem>>, vector<256x128xbf16>
    %cst_5 = arith.constant dense<0.000000e+00> : vector<128x128xf32>
    %4 = tpu.matmul %0, %3, %cst_5 {dimension_numbers = #tpu.dot_dimension_numbers<[1], [0], [0], [1], [0, 0, 1, 1], [], []>} : vector<128x256xbf16>, vector<256x128xbf16>, vector<128x128xf32> -> vector<128x128xf32>
    %c0_6 = arith.constant 0 : index
    %c0_7 = arith.constant 0 : index
    %5 = vector.load %arg4[%c0_6, %c0_7] : memref<128x1xf32, #tpu.memory_space<vmem>>, vector<128x1xf32>
    %cst_8 = arith.constant 0.699999988 : f32
    %6 = vector.broadcast %cst_8 : f32 to vector<128x1xf32>
    %7 = arith.mulf %6, %5 : vector<128x1xf32>
    %8 = vector.broadcast %7 : vector<128x1xf32> to vector<128x128xf32>
    %9 = arith.mulf %8, %2 : vector<128x128xf32>
    %10 = arith.truncf %9 : vector<128x128xf32> to vector<128x128xbf16>
    %c0_9 = arith.constant 0 : index
    %c0_10 = arith.constant 0 : index
    %11 = vector.load %arg6[%c0_9, %c0_10] : memref<128x128xbf16, #tpu.memory_space<vmem>>, vector<128x128xbf16>
    tpu.vector_store %arg6[%c0_9, %c0_10], %10 {strides = array<i32>} : memref<128x128xbf16, #tpu.memory_space<vmem>>, vector<128x128xbf16>,
    %c0_11 = arith.constant 0 : index
    %c0_12 = arith.constant 0 : index
    %12 = vector.load %arg5[%c0_11, %c0_12] : memref<128x1xf32, #tpu.memory_space<vmem>>, vector<128x1xf32>
    %cst_13 = arith.constant 3.000000e-01 : f32
    %13 = vector.broadcast %cst_13 : f32 to vector<128x1xf32>
    %14 = arith.mulf %13, %12 : vector<128x1xf32>
    %15 = vector.broadcast %14 : vector<128x1xf32> to vector<128x128xf32>
    %16 = arith.mulf %15, %4 : vector<128x128xf32>
    %17 = arith.truncf %16 : vector<128x128xf32> to vector<128x128xbf16>
    %c0_14 = arith.constant 0 : index
    %c0_15 = arith.constant 0 : index
    %18 = vector.load %arg7[%c0_14, %c0_15] : memref<128x128xbf16, #tpu.memory_space<vmem>>, vector<128x128xbf16>
    tpu.vector_store %arg7[%c0_14, %c0_15], %17 {strides = array<i32>} : memref<128x128xbf16, #tpu.memory_space<vmem>>, vector<128x128xbf16>,
    return
  }
  func.func @transform_0(%arg0: i32) -> (i32, i32) {
    %c0_i32 = arith.constant 0 : i32
    %c0_i32_0 = arith.constant 0 : i32
    return %arg0, %c0_i32 : i32, i32
  }
  func.func @transform_1(%arg0: i32) -> (i32, i32) {
    %c0_i32 = arith.constant 0 : i32
    %c0_i32_0 = arith.constant 0 : i32
    %c0_i32_1 = arith.constant 0 : i32
    return %c0_i32, %c0_i32_0 : i32, i32
  }
  func.func @transform_2(%arg0: i32) -> (i32, i32) {
    %c0_i32 = arith.constant 0 : i32
    %c0_i32_0 = arith.constant 0 : i32
    %c0_i32_1 = arith.constant 0 : i32
    return %c0_i32, %c0_i32_0 : i32, i32
  }
  func.func @transform_3(%arg0: i32) -> (i32, i32) {
    %c0_i32 = arith.constant 0 : i32
    %c0_i32_0 = arith.constant 0 : i32
    return %arg0, %c0_i32 : i32, i32
  }
  func.func @transform_4(%arg0: i32) -> (i32, i32) {
    %c0_i32 = arith.constant 0 : i32
    %c0_i32_0 = arith.constant 0 : i32
    return %arg0, %c0_i32 : i32, i32
  }
  func.func @transform_5(%arg0: i32) -> (i32, i32) {
    %c0_i32 = arith.constant 0 : i32
    %c0_i32_0 = arith.constant 0 : i32
    return %arg0, %c0_i32 : i32, i32
  }
  func.func @transform_6(%arg0: i32) -> (i32, i32) {
    %c0_i32 = arith.constant 0 : i32
    %c0_i32_0 = arith.constant 0 : i32
    return %arg0, %c0_i32 : i32, i32
  }
}

</mosaic_0001>

<bundles_post_ra>
// kernel: tpu_custom_call.1
= control target key start
LH: loop header
LB: loop body
LE: loop exit
PB: predicated region body
PF: predicated region fallthrough
CT: control target
= control target key end

     0   :  { %12 = vsyncpa [#allocation3], 0  ;;  %s2380_s0 = inlined_call_operand.vmem [shape: bf16[256,256], index: 0, kind: input, shape index: {}]   ;;  %s2381_s1 = inlined_call_operand.vmem [shape: bf16[256,128], index: 1, kind: input, shape index: {}]   ;;  %s2382_s2 = inlined_call_operand.vmem [shape: bf16[256,128], index: 2, kind: input, shape index: {}]   ;;  %s2383_s3 = inlined_call_operand.vmem [shape: f32[256,1], index: 3, kind: input, shape index: {}]   ;;  %s2384_s4 = inlined_call_operand.vmem [shape: f32[256,1], index: 4, kind: input, shape index: {}]   ;;  %s2385_s5 = inlined_call_operand.hbm [shape: bf16[256,128], index: 5, kind: output, shape index: {0}]   ;;  %s2386_s6 = inlined_call_operand.hbm [shape: bf16[256,128], index: 6, kind: output, shape index: {1}]  }
   0x1   :  { %14 = vsyncpa [#allocation3 + $0x1], 0 }
   0x2   :  { %15 = vsyncpa [#allocation5], 0 }
   0x3   :  { %17 = vsyncpa [#allocation5 + $0x1], 0  ;;  %s2023_s21 = smov 0   ;;  %s2025_s22 = smov 0  }
   0x4   :  { %s2027_s23 = smov 0   ;;  %s2029_s24 = smov 0  }
   0x5 LB: > { %s2044_s25 = sadd.s32 4294967295, %s1981_s24   ;;  %s1428_s26 = sadd.s32 4294967294, %s1981_s24   ;;  %s1981_s24 = sphi %s2029_s24, %s2392_s24   ;;  %s1977_s23 = sphi %s2027_s23, %s2391_s23   ;;  %s1973_s22 = sphi %s2025_s22, %s2390_s22   ;;  %s1969_s21 = sphi %s2023_s21, %s2389_s21  }
   0x6   : > { %s2048_s27 = sadd.s32 1, %s1981_s24   ;;  %s150_s28 = sadd.s32 1, %s1977_s23 }
   0x7   : > { %s147_s29 = ssub.s32 %s1981_s24, %s2048_s27  ;;  %p160_p0 = scmp.ne.s32.totalorder %s1977_s23, %s1973_s22 }
   0x8   : > { %p148_p1 = scmp.eq.s32.totalorder %s147_s29, 0  ;;  %p161_p2 = scmp.eq.s32.totalorder %s2044_s25, 1 }
   0x9   : > { %p166_p3 = scmp.ne.s32.totalorder %s1973_s22, %s1969_s21  ;;  %p167_p4 = scmp.eq.s32.totalorder %s1428_s26, 1 }
   0xa   : > { %s2059_s30 = scalar_select %p148_p1, %s1977_s23, %s150_s28  }
   0xb   : > { %p2061_p5 = por %p161_p2, %p160_p0  ;;  %p2065_p6 = por %p167_p4, %p166_p3 }
   0xc   : > { %p1431_p7 = scmp.ge.s32.totalorder %s1981_s24, 1  ;;  %p245_p8 = scmp.lt.s32.totalorder %s1981_s24, 3 }
   0xe   : > { %p246_p9 = pnand %p1431_p7, %p245_p8 }
   0xf   : > { %s1434_s11 = sshll.u32 (!%p246_p9), %s2044_s25, 4 }
  0x10   : > { %249 = sbr.rel (%p246_p9) target bundleno = 353 (0x161), region = 40  ;;  %p292_p10 = scmp.lt.s32.totalorder (!%p246_p9), %s1434_s11, 31 }
  0x15   : > { %v1835_v0 = vld [vmem:[%s2381_s1 + $0x78] sm:$0xff]   ;;  %v1983_v4 = vmov 0   ;;  %v1839_v5 = vld [vmem:[%s2381_s1 + $0x70] sm:$0xff]   ;;  %v1843_v9 = vld [vmem:[%s2381_s1 + $0x68] sm:$0xff]   ;;  %s2394_s11 = smov (!%p292_p10, %s1434_s11), 31 }
  0x16   : > { %v1836_v1 = vld [vmem:[%s2382_s2 + $0x78] sm:$0xff]   ;;  %1658 = vmatprep.subr.bf16.mxu0 %v1835_v0  ;;  %1834 = vset.pattern.permute.xlu1 %v1983_v4  ;;  %v1840_v6 = vld [vmem:[%s2382_s2 + $0x70] sm:$0xff]   ;;  %v1844_v10 = vld [vmem:[%s2382_s2 + $0x68] sm:$0xff]   ;;  %s2153_s20 = sshll.u32 %s2394_s11, 3 }
  0x17   : > { %v1837_v2 = vld [vmem:[%s2381_s1 + $0x38] sm:$0xff]   ;;  %1722 = vmatprep.subr.bf16.mxu1 %v1836_v1  ;;  %1833 = vset.pattern.permute.xlu0 %v1983_v4  ;;  %v1841_v7 = vld [vmem:[%s2381_s1 + $0x30] sm:$0xff]   ;;  %v1845_v11 = vld [vmem:[%s2381_s1 + $0x28] sm:$0xff]   ;;  %s2168_s14 = scalar_lea.vmem %s2380_s0, %s2153_s20  ;;  %s2180_s28 = scalar_lea.vmem %s2383_s3, %s2153_s20 }
  0x18   : > { %v1838_v3 = vld [vmem:[%s2382_s2 + $0x38] sm:$0xff]   ;;  %1659 = vmatpush3.bf16.msra.mxu0 %v1837_v2  ;;  %v1842_v8 = vld [vmem:[%s2382_s2 + $0x30] sm:$0xff]   ;;  %v1846_v12 = vld [vmem:[%s2382_s2 + $0x28] sm:$0xff]   ;;  %s2211_s10 = scalar_lea.vmem %s2384_s4, %s2153_s20  ;;  %s2261_s20 = sand.u32 1, %s1973_s22  }
  0x19   : > { %1723 = vmatpush3.bf16.msra.mxu1 %v1838_v3  ;;  %1660 = vmatprep.subr.bf16.mxu0 %v1839_v5  ;;  %v1847_v13 = vld [vmem:[%s2381_s1 + $0x60] sm:$0xff]   ;;  %v1851_v17 = vld [vmem:[%s2381_s1 + $0x58] sm:$0xff]   ;;  %v1855_v21 = vld [vmem:[%s2381_s1 + $0x50] sm:$0xff]   ;;  %s1432_s12 = sshll.u32 %s2261_s20, 6  ;;  %s1276_s29 = scalar_lea.sflag [#allocation3], %s2261_s20 }
  0x1a   : > { %1724 = vmatprep.subr.bf16.mxu1 %v1840_v6  ;;  %v1848_v14 = vld [vmem:[%s2382_s2 + $0x60] sm:$0xff]   ;;  %v1852_v18 = vld [vmem:[%s2382_s2 + $0x58] sm:$0xff]   ;;  %v1856_v22 = vld [vmem:[%s2382_s2 + $0x50] sm:$0xff]   ;;  %s2264_s13 = scalar_lea.vmem [#allocation2], %s1432_s12  ;;  %s2267_s11 = scalar_lea.vmem [#allocation4], %s1432_s12 }
  0x1b   : > { %v1849_v15 = vld [vmem:[%s2381_s1 + $0x20] sm:$0xff]   ;;  %v1853_v19 = vld [vmem:[%s2381_s1 + $0x18] sm:$0xff]   ;;  %v1857_v23 = vld [vmem:[%s2381_s1 + $0x10] sm:$0xff]   ;;  %s1294_s15 = sshll.u32 %s2264_s13, 4  ;;  %s1310_s16 = sshll.u32 %s2267_s11, 4  ;;  %s2302_s15 = int_to_ptr.vmem [resolvable:$true] %s1294_s15  ;;  %s2309_s16 = int_to_ptr.vmem [resolvable:$true] %s1310_s16 }
  0x1c   : > { %1661 = vmatpush3.bf16.msra.mxu0 %v1841_v7  ;;  %v1850_v16 = vld [vmem:[%s2382_s2 + $0x20] sm:$0xff]   ;;  %v1854_v20 = vld [vmem:[%s2382_s2 + $0x18] sm:$0xff]   ;;  %v1858_v24 = vld [vmem:[%s2382_s2 + $0x10] sm:$0xff]   ;;  %s1891_s9 = scalar_lea.vmem %s2302_s15, 1024 }
  0x1d   : > { %1725 = vmatpush3.bf16.msra.mxu1 %v1842_v8  ;;  %1662 = vmatprep.subr.bf16.mxu0 %v1843_v9  ;;  %v1859_v25 = vld [vmem:[%s2381_s1 + $0x48] sm:$0xff]   ;;  %v1863_v29 = vld [vmem:[%s2381_s1 + $0x40] sm:$0xff]   ;;  %v1870_v35 = vld [vmem:[%s2168_s14 + $0x14] ss:$8 sps:$4 sm:$0xff]   ;;  %p1892_p11 = scmp.ne.s32.totalorder %s2302_s15, %s1891_s9 }
  0x1e   : > { %1726 = vmatprep.subr.bf16.mxu1 %v1844_v10  ;;  %v1860_v26 = vld [vmem:[%s2382_s2 + $0x48] sm:$0xff]   ;;  %v1864_v30 = vld [vmem:[%s2382_s2 + $0x40] sm:$0xff]   ;;  %v861_v36 = vld [vmem:[%s2180_s28 + $0x10] sm:$0xff] }
  0x1f   : > { %v1861_v27 = vld [vmem:[%s2381_s1 + $0x8] sm:$0xff]   ;;  %v1865_v31 = vld [vmem:[%s2381_s1] sm:$0xff]   ;;  %v877_v37 = vmul.f32 0.7, %v861_v36  ;;  %v862_v40 = vld [vmem:[%s2180_s28 + $0x18] sm:$0xff]  ;;  %p1893_p12 = pnand %p1892_p11, %p2061_p5 }
  0x20   : > { %1663 = vmatpush3.bf16.msra.mxu0 %v1845_v11  ;;  %v1862_v28 = vld [vmem:[%s2382_s2 + $0x8] sm:$0xff]   ;;  %v1866_v32 = vld [vmem:[%s2382_s2] sm:$0xff]   ;;  %v878_v42 = vmul.f32 0.7, %v862_v40  ;;  %v1872_v46 = vld [vmem:[%s2168_s14 + $0x10] ss:$8 sps:$4 sm:$0xff]  }
  0x21   : > { %1727 = vmatpush3.bf16.msra.mxu1 %v1846_v12  ;;  %1664 = vmatprep.subr.bf16.mxu0 %v1847_v13  ;;  %v1867_v33 = vld [vmem:[%s2168_s14] ss:$8 sps:$4 sm:$0xff]   ;;  %v1869_v34 = vld [vmem:[%s2168_s14 + $0x4] ss:$8 sps:$4 sm:$0xff]   ;;  %v866_v50 = vld [vmem:[%s2180_s28 + $0x38] sm:$0xff]  ;;  %p1894_p13 = pneg %p1893_p12 }
  0x22   : > { %1728 = vmatprep.subr.bf16.mxu1 %v1848_v14  ;;  %569 = vmatprep.mubr.bf16.mxu0 %v1869_v34  ;;  %v859_v38 = vld [vmem:[%s2180_s28] sm:$0xff]  ;;  %v860_v41 = vld [vmem:[%s2180_s28 + $0x8] sm:$0xff]  ;;  %v865_v51 = vld [vmem:[%s2180_s28 + $0x30] sm:$0xff]  ;;  %v882_v52 = vmul.f32 0.7, %v866_v50 }
  0x23   : > { %794 = vmatprep.mubr.bf16.mxu1 %v1869_v34  ;;  %v875_v39 = vmul.f32 0.7, %v859_v38  ;;  %903 = vperm.xlu1 %1834, %v877_v37   ;;  %v876_v43 = vmul.f32 0.7, %v860_v41  ;;  %v864_v44 = vld [vmem:[%s2180_s28 + $0x28] sm:$0xff]  ;;  %v863_v45 = vld [vmem:[%s2180_s28 + $0x20] sm:$0xff] }
  0x24   : > { %1665 = vmatpush3.bf16.msra.mxu0 %v1849_v15  ;;  %v1873_v47 = vld [vmem:[%s2168_s14 + $0x24] ss:$8 sps:$4 sm:$0xff]   ;;  %v880_v48 = vmul.f32 0.7, %v864_v44  ;;  %v879_v49 = vmul.f32 0.7, %v863_v45 }
  0x25   : > { %1729 = vmatpush3.bf16.msra.mxu1 %v1850_v16  ;;  %1666 = vmatprep.subr.bf16.mxu0 %v1851_v17  ;;  %v881_v53 = vmul.f32 0.7, %v865_v51  ;;  %v868_v54 = vld [vmem:[%s2180_s28 + $0x48] sm:$0xff]  ;;  %v867_v55 = vld [vmem:[%s2180_s28 + $0x40] sm:$0xff]  ;;  %v1876_v57 = vld [vmem:[%s2168_s14 + $0x34] ss:$8 sps:$4 sm:$0xff]  }
  0x26   : > { %1730 = vmatprep.subr.bf16.mxu1 %v1852_v18  ;;  %893 = vperm.xlu0 %1833, %v875_v39   ;;  %v1875_v56 = vld [vmem:[%s2168_s14 + $0x20] ss:$8 sps:$4 sm:$0xff]   ;;  %v884_v58 = vmul.f32 0.7, %v868_v54  ;;  %v883_v59 = vmul.f32 0.7, %v867_v55 }
  0x27   : > { %908 = vperm.xlu1 %1834, %v878_v42   ;;  %v870_v60 = vld [vmem:[%s2180_s28 + $0x58] sm:$0xff]  ;;  %v869_v61 = vld [vmem:[%s2180_s28 + $0x50] sm:$0xff]  ;;  %v872_v0 = vld [vmem:[%s2180_s28 + $0x68] sm:$0xff] }
  0x28   : > { %1667 = vmatpush3.bf16.msra.mxu0 %v1853_v19  ;;  %v886_v62 = vmul.f32 0.7, %v870_v60  ;;  %v885_v63 = vmul.f32 0.7, %v869_v61  ;;  %v871_v1 = vld [vmem:[%s2180_s28 + $0x60] sm:$0xff]  ;;  %v874_v6 = vld [vmem:[%s2180_s28 + $0x78] sm:$0xff] }
  0x29   : > { %1731 = vmatpush3.bf16.msra.mxu1 %v1854_v20  ;;  %1668 = vmatprep.subr.bf16.mxu0 %v1855_v21  ;;  %v1878_v2 = vld [vmem:[%s2168_s14 + $0x30] ss:$8 sps:$4 sm:$0xff]   ;;  %v1879_v3 = vld [vmem:[%s2168_s14 + $0x44] ss:$8 sps:$4 sm:$0xff]   ;;  %v888_v4 = vmul.f32 0.7, %v872_v0 }
  0x2a   : > { %1732 = vmatprep.subr.bf16.mxu1 %v1856_v22  ;;  %898 = vperm.xlu0 %1833, %v876_v43   ;;  %v887_v5 = vmul.f32 0.7, %v871_v1  ;;  %v873_v7 = vld [vmem:[%s2180_s28 + $0x70] sm:$0xff]  ;;  %v890_v8 = vmul.f32 0.7, %v874_v6  ;;  %v1068_v10 = vld [vmem:[%s2211_s10 + $0x8] sm:$0xff] }
  0x2b   : > { %918 = vperm.xlu1 %1834, %v880_v48   ;;  %v889_v9 = vmul.f32 0.7, %v873_v7  ;;  %v1067_v11 = vld [vmem:[%s2211_s10] sm:$0xff]  ;;  %v1882_v13 = vld [vmem:[%s2168_s14 + $0x54] ss:$8 sps:$4 sm:$0xff]   ;;  %v1072_v20 = vld [vmem:[%s2211_s10 + $0x28] sm:$0xff] }
  0x2c   : > { %1669 = vmatpush3.bf16.msra.mxu0 %v1857_v23  ;;  %v1881_v12 = vld [vmem:[%s2168_s14 + $0x40] ss:$8 sps:$4 sm:$0xff]   ;;  %v1084_v14 = vmul.f32 0.3, %v1068_v10  ;;  %v1083_v15 = vmul.f32 0.3, %v1067_v11 }
  0x2d   : > { %1733 = vmatpush3.bf16.msra.mxu1 %v1858_v24  ;;  %1670 = vmatprep.subr.bf16.mxu0 %v1859_v25  ;;  %v1070_v16 = vld [vmem:[%s2211_s10 + $0x18] sm:$0xff]  ;;  %v1069_v17 = vld [vmem:[%s2211_s10 + $0x10] sm:$0xff]  ;;  %v1071_v21 = vld [vmem:[%s2211_s10 + $0x20] sm:$0xff]  ;;  %v1088_v24 = vmul.f32 0.3, %v1072_v20 }
  0x2e   : > { %1734 = vmatprep.subr.bf16.mxu1 %v1860_v26  ;;  %913 = vperm.xlu0 %1833, %v879_v49   ;;  %v1086_v18 = vmul.f32 0.3, %v1070_v16  ;;  %v1085_v19 = vmul.f32 0.3, %v1069_v17  ;;  %v1884_v22 = vld [vmem:[%s2168_s14 + $0x50] ss:$8 sps:$4 sm:$0xff]  }
  0x2f   : > { %928 = vperm.xlu1 %1834, %v882_v52   ;;  %v1885_v23 = vld [vmem:[%s2168_s14 + $0x64] ss:$8 sps:$4 sm:$0xff]   ;;  %v1087_v25 = vmul.f32 0.3, %v1071_v21  ;;  %v1074_v26 = vld [vmem:[%s2211_s10 + $0x38] sm:$0xff]  ;;  %v1077_v37 = vld [vmem:[%s2211_s10 + $0x50] sm:$0xff] }
  0x30   : > { %1671 = vmatpush3.bf16.msra.mxu0 %v1861_v27  ;;  %v1073_v27 = vld [vmem:[%s2211_s10 + $0x30] sm:$0xff]  ;;  %v1078_v36 = vld [vmem:[%s2211_s10 + $0x58] sm:$0xff]  ;;  %v1093_v39 = vmul.f32 0.3, %v1077_v37  ;;  %v1080_v40 = vld [vmem:[%s2211_s10 + $0x68] sm:$0xff] }
  0x31   : > { %1735 = vmatpush3.bf16.msra.mxu1 %v1862_v28  ;;  %1672 = vmatprep.subr.bf16.mxu0 %v1863_v29  ;;  %v1090_v28 = vmul.f32 0.3, %v1074_v26  ;;  %v1089_v29 = vmul.f32 0.3, %v1073_v27  ;;  %v1094_v38 = vmul.f32 0.3, %v1078_v36 }
  0x32   : > { %1736 = vmatprep.subr.bf16.mxu1 %v1864_v30  ;;  %923 = vperm.xlu0 %1833, %v881_v53   ;;  %v1076_v30 = vld [vmem:[%s2211_s10 + $0x48] sm:$0xff]  ;;  %v1079_v41 = vld [vmem:[%s2211_s10 + $0x60] sm:$0xff]  ;;  %v1890_v42 = vld [vmem:[%s2168_s14 + $0x70] ss:$8 sps:$4 sm:$0xff]   ;;  %v1096_v43 = vmul.f32 0.3, %v1080_v40 }
  0x33   : > { %938 = vperm.xlu1 %1834, %v884_v58   ;;  %v1092_v34 = vmul.f32 0.3, %v1076_v30  ;;  %v1095_v44 = vmul.f32 0.3, %v1079_v41  ;;  %v1082_v45 = vld [vmem:[%s2211_s10 + $0x78] sm:$0xff] }
  0x34   : > { %1673 = vmatpush3.bf16.msra.mxu0 %v1865_v31  ;;  %v1075_v31 = vld [vmem:[%s2211_s10 + $0x40] sm:$0xff] }
  0x35   : > { %1737 = vmatpush3.bf16.msra.mxu1 %v1866_v32  ;;  %v1887_v32 = vld [vmem:[%s2168_s14 + $0x60] ss:$8 sps:$4 sm:$0xff]  }
  0x36   : > { %933 = vperm.xlu0 %1833, %v883_v59  }
  0x37   : > { %570 = vmatmul.mubr.bf16.vlgmr.msra.gmra.mxu0 %v1867_v33  ;;  %948 = vperm.xlu1 %1834, %v886_v62  }
  0x38   : > { %795 = vmatmul.mubr.bf16.vlgmr.msra.gmra.mxu1 %v1867_v33  ;;  %577 = vmatprep.mubr.bf16.mxu0 %v1870_v35  ;;  %v1888_v33 = vld [vmem:[%s2168_s14 + $0x74] ss:$8 sps:$4 sm:$0xff]   ;;  %s1562_s14 = sshll.u32 %s2044_s25, 10 }
  0x39   : > { %802 = vmatprep.mubr.bf16.mxu1 %v1870_v35  ;;  %v1091_v35 = vmul.f32 0.3, %v1075_v31  ;;  %s2300_s19 = scalar_lea.hbm %s2385_s5, %s1562_s14  ;;  %s2307_s28 = scalar_lea.hbm %s2386_s6, %s1562_s14 }
  0x3a   : > { %943 = vperm.xlu0 %1833, %v885_v63  }
  0x3b   : > { %958 = vperm.xlu1 %1834, %v888_v4  }
  0x3e   : > { %953 = vperm.xlu0 %1833, %v887_v5  }
  0x3f   : > { %578 = vmatmul.mubr.bf16.gmra.mxu0 %v1872_v46  ;;  %968 = vperm.xlu1 %1834, %v890_v8  }
  0x40   : > { %803 = vmatmul.mubr.bf16.gmra.mxu1 %v1872_v46  ;;  %585 = vmatprep.mubr.bf16.mxu0 %v1873_v47  ;;  %v1081_v46 = vld [vmem:[%s2211_s10 + $0x70] sm:$0xff]  ;;  %s1984_s10 = smov [#allocation2]  }
  0x41   : > { %810 = vmatprep.mubr.bf16.mxu1 %v1873_v47  ;;  %v1098_v47 = vmul.f32 0.3, %v1082_v45  ;;  %v1097_v48 = vmul.f32 0.3, %v1081_v46  ;;  %s1895_s12 = sshll.u32 %s1984_s10, 4  ;;  %s1896_s12 = int_to_ptr.vmem [resolvable:$false] %s1895_s12 }
  0x42   : > { %963 = vperm.xlu0 %1833, %v889_v9   ;;  %s1897_s17 = scalar_lea.vmem %s1896_s12, 2048  ;;  %p1898_p0 = scmp.lt.s32.totalorder %s2302_s15, %s1896_s12 }
  0x43   : > { %1106 = vperm.xlu1 %1834, %v1084_v14   ;;  %p1899_p1 = scmp.lt.s32.totalorder %s1897_s17, %s1891_s9 }
  0x45   : > { %p1900_p2 = por %p1899_p1, %p1898_p0 }
  0x46   : > { %1101 = vperm.xlu0 %1833, %v1083_v15  }
  0x47   : > { %586 = vmatmul.mubr.bf16.gmra.mxu0 %v1875_v56  ;;  %1116 = vperm.xlu1 %1834, %v1086_v18   ;;  %p1901_p3 = pnand %p1900_p2, %p1894_p13 }
  0x48   : > { %811 = vmatmul.mubr.bf16.gmra.mxu1 %v1875_v56  ;;  %593 = vmatprep.mubr.bf16.mxu0 %v1876_v57 }
  0x49   : > { %818 = vmatprep.mubr.bf16.mxu1 %v1876_v57 }
  0x4a   : > { %1111 = vperm.xlu0 %1833, %v1085_v19  }
  0x4b   : > { %1126 = vperm.xlu1 %1834, %v1088_v24  }
  0x4e   : > { %1121 = vperm.xlu0 %1833, %v1087_v25  }
  0x4f   : > { %594 = vmatmul.mubr.bf16.gmra.mxu0 %v1878_v2  ;;  %1136 = vperm.xlu1 %1834, %v1090_v28  }
  0x50   : > { %819 = vmatmul.mubr.bf16.gmra.mxu1 %v1878_v2  ;;  %601 = vmatprep.mubr.bf16.mxu0 %v1879_v3 }
  0x51   : > { %826 = vmatprep.mubr.bf16.mxu1 %v1879_v3 }
  0x52   : > { %1131 = vperm.xlu0 %1833, %v1089_v29  }
  0x53   : > { %1146 = vperm.xlu1 %1834, %v1092_v34  }
  0x56   : > { %1141 = vperm.xlu0 %1833, %v1091_v35  }
  0x57   : > { %602 = vmatmul.mubr.bf16.gmra.mxu0 %v1881_v12  ;;  %1156 = vperm.xlu1 %1834, %v1094_v38  }
  0x58   : > { %827 = vmatmul.mubr.bf16.gmra.mxu1 %v1881_v12  ;;  %609 = vmatprep.mubr.bf16.mxu0 %v1882_v13 }
  0x59   : > { %834 = vmatprep.mubr.bf16.mxu1 %v1882_v13 }
  0x5a   : > { %1151 = vperm.xlu0 %1833, %v1093_v39  }
  0x5b   : > { %1166 = vperm.xlu1 %1834, %v1096_v43  }
  0x5e   : > { %1161 = vperm.xlu0 %1833, %v1095_v44  }
  0x5f   : > { %610 = vmatmul.mubr.bf16.gmra.mxu0 %v1884_v22  ;;  %1176 = vperm.xlu1 %1834, %v1098_v47  }
  0x60   : > { %835 = vmatmul.mubr.bf16.gmra.mxu1 %v1884_v22  ;;  %617 = vmatprep.mubr.bf16.mxu0 %v1885_v23 }
  0x61   : > { %842 = vmatprep.mubr.bf16.mxu1 %v1885_v23 }
  0x62   : > { %1171 = vperm.xlu0 %1833, %v1097_v48  }
  0x67   : > { %618 = vmatmul.mubr.bf16.gmra.mxu0 %v1887_v32 }
  0x68   : > { %843 = vmatmul.mubr.bf16.gmra.mxu1 %v1887_v32  ;;  %625 = vmatprep.mubr.bf16.mxu0 %v1888_v33 }
  0x69   : > { %850 = vmatprep.mubr.bf16.mxu1 %v1888_v33 }
  0x6f   : > { %626 = vmatmul.mubr.bf16.gmra.mxu0 %v1890_v42 }
  0x70   : > { %851 = vmatmul.mubr.bf16.gmra.mxu1 %v1890_v42 }
  0x9e   : > { %v904_v49 = vpop.permute.xlu1 %903 }
  0xa1   : > { %v894_v50 = vpop.permute.xlu0 %893 }
  0xa2   : > { %v909_v51 = vpop.permute.xlu1 %908 }
  0xa5   : > { %v899_v52 = vpop.permute.xlu0 %898 }
  0xa6   : > { %v2236_v53 = vpop.permute.xlu1 %918 }
  0xa9   : > { %v2238_v54 = vpop.permute.xlu0 %913 }
  0xaa   : > { %v2240_v55 = vpop.permute.xlu1 %928 }
  0xad   : > { %v2242_v56 = vpop.permute.xlu0 %923 }
  0xae   : > { %v2244_v57 = vpop.permute.xlu1 %938 }
  0xb1   : > { %v2246_v58 = vpop.permute.xlu0 %933 }
  0xb2   : > { %v2248_v59 = vpop.permute.xlu1 %948 }
  0xb5   : > { %v2250_v60 = vpop.permute.xlu0 %943 }
  0xb6   : > { %v2252_v61 = vpop.permute.xlu1 %958 }
  0xb9   : > { %v2254_v62 = vpop.permute.xlu0 %953 }
  0xba   : > { %v2256_v1 = vpop.permute.xlu1 %968 }
  0xbd   : > { %v2258_v2 = vpop.permute.xlu0 %963 }
  0xbe   : > { %v1107_v11 = vpop.permute.xlu1 %1106 }
  0xc1   : > { %v1102_v12 = vpop.permute.xlu0 %1101 }
  0xc2   : > { %v1117_v31 = vpop.permute.xlu1 %1116 }
  0xc5   : > { %v1112_v32 = vpop.permute.xlu0 %1111 }
  0xf7   : > { %v1674_v63 = vpop.f32.mrf.mxu0 }
  0xf8   : > { %v1738_v0 = vpop.f32.mrf.mxu1 }
  0xf9   : > { %v1675_v3 = vpop.f32.mrf.mxu0 }
  0xfa   : > { %v1739_v4 = vpop.f32.mrf.mxu1  ;;  %v1676_v7 = vadd.f32 %v1675_v3, %v1674_v63  ;;  %v1127_v63 = vpop.permute.xlu1 %1126 }
  0xfb   : > { %v1677_v5 = vpop.f32.mrf.mxu0  ;;  %v1740_v8 = vadd.f32 %v1739_v4, %v1738_v0  ;;  %v1122_v0 = vpop.permute.xlu0 %1121 }
  0xfc   : > { %v1741_v6 = vpop.f32.mrf.mxu1  ;;  %v971_v17 = vmul.f32 %v1676_v7, %v894_v50 }
  0xfd   : > { %v1678_v9 = vpop.f32.mrf.mxu0  ;;  %v1179_v18 = vmul.f32 %v1740_v8, %v1102_v12 }
  0xfe   : > { %v1742_v10 = vpop.f32.mrf.mxu1  ;;  %v1679_v13 = vadd.f32 %v1678_v9, %v1677_v5 }
  0xff   : > { %v1743_v14 = vadd.f32 %v1742_v10, %v1741_v6  ;;  %v1680_v15 = vpop.f32.mrf.mxu0 }
 0x100   : > { %v1744_v16 = vpop.f32.mrf.mxu1  ;;  %v972_v19 = vmul.f32 %v1679_v13, %v899_v52 }
 0x101   : > { %v1180_v20 = vmul.f32 %v1743_v14, %v1107_v11  ;;  %v1681_v21 = vpop.f32.mrf.mxu0 }
 0x102   : > { %v1745_v22 = vpop.f32.mrf.mxu1  ;;  %v1567_v23 = vpack.c.bf16 %v972_v19, %v971_v17  ;;  %v1682_v27 = vadd.f32 %v1681_v21, %v1680_v15  ;;  %v1137_v19 = vpop.permute.xlu1 %1136 }
 0x103   : > { %v1607_v24 = vpack.c.bf16 %v1180_v20, %v1179_v18  ;;  %v1683_v25 = vpop.f32.mrf.mxu0  ;;  %v1746_v28 = vadd.f32 %v1745_v22, %v1744_v16  ;;  %v1132_v20 = vpop.permute.xlu0 %1131 }
 0x104   : > { %v1747_v26 = vpop.f32.mrf.mxu1  ;;  %1568 = vst [vmem:[%s2264_s13] sm:$0xff] %v1567_v23   ;;  %v973_v37 = vmul.f32 %v1682_v27, %v904_v49 }
 0x105   : > { %1608 = vst [vmem:[%s2267_s11] sm:$0xff] %v1607_v24   ;;  %v1684_v29 = vpop.f32.mrf.mxu0  ;;  %v1181_v38 = vmul.f32 %v1746_v28, %v1112_v32 }
 0x106   : > { %v1748_v30 = vpop.f32.mrf.mxu1  ;;  %v1685_v33 = vadd.f32 %v1684_v29, %v1683_v25 }
 0x107   : > { %v1749_v34 = vadd.f32 %v1748_v30, %v1747_v26  ;;  %v1686_v35 = vpop.f32.mrf.mxu0 }
 0x108   : > { %v1750_v36 = vpop.f32.mrf.mxu1  ;;  %v974_v39 = vmul.f32 %v1685_v33, %v909_v51 }
 0x109   : > { %v1182_v40 = vmul.f32 %v1749_v34, %v1117_v31  ;;  %v1687_v41 = vpop.f32.mrf.mxu0 }
 0x10a   : > { %v1751_v42 = vpop.f32.mrf.mxu1  ;;  %v1572_v43 = vpack.c.bf16 %v974_v39, %v973_v37  ;;  %v1688_v47 = vadd.f32 %v1687_v41, %v1686_v35  ;;  %v1147_v37 = vpop.permute.xlu1 %1146 }
 0x10b   : > { %v1612_v44 = vpack.c.bf16 %v1182_v40, %v1181_v38  ;;  %v1689_v45 = vpop.f32.mrf.mxu0  ;;  %v1752_v48 = vadd.f32 %v1751_v42, %v1750_v36  ;;  %v1142_v38 = vpop.permute.xlu0 %1141 }
 0x10c   : > { %v1753_v46 = vpop.f32.mrf.mxu1  ;;  %1644 = vst [vmem:[%s2264_s13 + $0x8] sm:$0xff] %v1572_v43   ;;  %v975_v5 = vmul.f32 %v1688_v47, %v2238_v54 }
 0x10d   : > { %1651 = vst [vmem:[%s2267_s11 + $0x8] sm:$0xff] %v1612_v44   ;;  %v1690_v50 = vpop.f32.mrf.mxu0  ;;  %v1183_v6 = vmul.f32 %v1752_v48, %v1122_v0 }
 0x10e   : > { %v1754_v52 = vpop.f32.mrf.mxu1  ;;  %v1691_v49 = vadd.f32 %v1690_v50, %v1689_v45 }
 0x10f   : > { %v1755_v3 = vadd.f32 %v1754_v52, %v1753_v46  ;;  %v1692_v51 = vpop.f32.mrf.mxu0 }
 0x110   : > { %v1756_v4 = vpop.f32.mrf.mxu1  ;;  %v976_v7 = vmul.f32 %v1691_v49, %v2236_v53 }
 0x111   : > { %v1184_v8 = vmul.f32 %v1755_v3, %v1127_v63  ;;  %v1693_v9 = vpop.f32.mrf.mxu0 }
 0x112   : > { %v1757_v10 = vpop.f32.mrf.mxu1  ;;  %v1577_v11 = vpack.c.bf16 %v976_v7, %v975_v5  ;;  %v1694_v15 = vadd.f32 %v1693_v9, %v1692_v51  ;;  %v1157_v51 = vpop.permute.xlu1 %1156 }
 0x113   : > { %v1617_v12 = vpack.c.bf16 %v1184_v8, %v1183_v6  ;;  %v1695_v13 = vpop.f32.mrf.mxu0  ;;  %v1758_v16 = vadd.f32 %v1757_v10, %v1756_v4  ;;  %v1152_v4 = vpop.permute.xlu0 %1151 }
 0x114   : > { %v1759_v14 = vpop.f32.mrf.mxu1  ;;  %1645 = vst [vmem:[%s2264_s13 + $0x10] sm:$0xff] %v1577_v11   ;;  %v977_v23 = vmul.f32 %v1694_v15, %v2242_v56 }
 0x115   : > { %1652 = vst [vmem:[%s2267_s11 + $0x10] sm:$0xff] %v1617_v12   ;;  %v1696_v17 = vpop.f32.mrf.mxu0  ;;  %v1185_v24 = vmul.f32 %v1758_v16, %v1132_v20 }
 0x116   : > { %v1760_v18 = vpop.f32.mrf.mxu1  ;;  %v1697_v54 = vadd.f32 %v1696_v17, %v1695_v13 }
 0x117   : > { %v1761_v21 = vadd.f32 %v1760_v18, %v1759_v14  ;;  %v1698_v53 = vpop.f32.mrf.mxu0 }
 0x118   : > { %v1762_v22 = vpop.f32.mrf.mxu1  ;;  %v978_v25 = vmul.f32 %v1697_v54, %v2240_v55  ;;  %v1167_v54 = vpop.permute.xlu1 %1166 }
 0x119   : > { %v1186_v26 = vmul.f32 %v1761_v21, %v1137_v19  ;;  %v1699_v27 = vpop.f32.mrf.mxu0  ;;  %v1162_v21 = vpop.permute.xlu0 %1161 }
 0x11a   : > { %v1763_v28 = vpop.f32.mrf.mxu1  ;;  %v1582_v29 = vpack.c.bf16 %v978_v25, %v977_v23  ;;  %v1700_v33 = vadd.f32 %v1699_v27, %v1698_v53 }
 0x11b   : > { %v1622_v30 = vpack.c.bf16 %v1186_v26, %v1185_v24  ;;  %v1701_v31 = vpop.f32.mrf.mxu0  ;;  %v1764_v34 = vadd.f32 %v1763_v28, %v1762_v22 }
 0x11c   : > { %v1765_v32 = vpop.f32.mrf.mxu1  ;;  %1646 = vst [vmem:[%s2264_s13 + $0x18] sm:$0xff] %v1582_v29   ;;  %v979_v41 = vmul.f32 %v1700_v33, %v2246_v58 }
 0x11d   : > { %1653 = vst [vmem:[%s2267_s11 + $0x18] sm:$0xff] %v1622_v30   ;;  %v1702_v35 = vpop.f32.mrf.mxu0  ;;  %v1187_v42 = vmul.f32 %v1764_v34, %v1142_v38  ;;  %v1172_v38 = vpop.permute.xlu0 %1171 }
 0x11e   : > { %v1766_v36 = vpop.f32.mrf.mxu1  ;;  %v1703_v56 = vadd.f32 %v1702_v35, %v1701_v31 }
 0x11f   : > { %v1767_v39 = vadd.f32 %v1766_v36, %v1765_v32  ;;  %v1704_v55 = vpop.f32.mrf.mxu0 }
 0x120   : > { %v1768_v40 = vpop.f32.mrf.mxu1  ;;  %v980_v43 = vmul.f32 %v1703_v56, %v2244_v57 }
 0x121   : > { %v1188_v44 = vmul.f32 %v1767_v39, %v1147_v37  ;;  %v1705_v45 = vpop.f32.mrf.mxu0 }
 0x122   : > { %v1769_v46 = vpop.f32.mrf.mxu1  ;;  %v1587_v47 = vpack.c.bf16 %v980_v43, %v979_v41  ;;  %v1706_v63 = vadd.f32 %v1705_v45, %v1704_v55 }
 0x123   : > { %v1627_v48 = vpack.c.bf16 %v1188_v44, %v1187_v42  ;;  %v1707_v50 = vpop.f32.mrf.mxu0  ;;  %v1770_v0 = vadd.f32 %v1769_v46, %v1768_v40 }
 0x124   : > { %v1771_v52 = vpop.f32.mrf.mxu1  ;;  %1647 = vst [vmem:[%s2264_s13 + $0x20] sm:$0xff] %v1587_v47   ;;  %v981_v7 = vmul.f32 %v1706_v63, %v2250_v60 }
 0x125   : > { %1654 = vst [vmem:[%s2267_s11 + $0x20] sm:$0xff] %v1627_v48   ;;  %v1708_v49 = vpop.f32.mrf.mxu0  ;;  %v1189_v8 = vmul.f32 %v1770_v0, %v1152_v4 }
 0x126   : > { %v1772_v3 = vpop.f32.mrf.mxu1  ;;  %v1709_v58 = vadd.f32 %v1708_v49, %v1707_v50 }
 0x127   : > { %v1773_v5 = vadd.f32 %v1772_v3, %v1771_v52  ;;  %v1710_v57 = vpop.f32.mrf.mxu0 }
 0x128   : > { %v1774_v6 = vpop.f32.mrf.mxu1  ;;  %v982_v9 = vmul.f32 %v1709_v58, %v2248_v59 }
 0x129   : > { %v1190_v10 = vmul.f32 %v1773_v5, %v1157_v51  ;;  %v1711_v11 = vpop.f32.mrf.mxu0 }
 0x12a   : > { %v1775_v12 = vpop.f32.mrf.mxu1  ;;  %v1592_v13 = vpack.c.bf16 %v982_v9, %v981_v7  ;;  %v1712_v17 = vadd.f32 %v1711_v11, %v1710_v57 }
 0x12b   : > { %v1632_v14 = vpack.c.bf16 %v1190_v10, %v1189_v8  ;;  %v1713_v15 = vpop.f32.mrf.mxu0  ;;  %v1776_v18 = vadd.f32 %v1775_v12, %v1774_v6 }
 0x12c   : > { %v1777_v16 = vpop.f32.mrf.mxu1  ;;  %1648 = vst [vmem:[%s2264_s13 + $0x28] sm:$0xff] %v1592_v13   ;;  %v983_v23 = vmul.f32 %v1712_v17, %v2254_v62 }
 0x12d   : > { %1655 = vst [vmem:[%s2267_s11 + $0x28] sm:$0xff] %v1632_v14   ;;  %v1714_v19 = vpop.f32.mrf.mxu0  ;;  %v1191_v24 = vmul.f32 %v1776_v18, %v1162_v21 }
 0x12e   : > { %v1778_v20 = vpop.f32.mrf.mxu1  ;;  %v1715_v60 = vadd.f32 %v1714_v19, %v1713_v15 }
 0x12f   : > { %v1779_v53 = vadd.f32 %v1778_v20, %v1777_v16  ;;  %v1716_v59 = vpop.f32.mrf.mxu0 }
 0x130   : > { %v1780_v22 = vpop.f32.mrf.mxu1  ;;  %v984_v25 = vmul.f32 %v1715_v60, %v2252_v61  ;;  %v1177_v61 = vpop.permute.xlu1 %1176 }
 0x131   : > { %v1192_v26 = vmul.f32 %v1779_v53, %v1167_v54  ;;  %v1717_v27 = vpop.f32.mrf.mxu0 }
 0x132   : > { %v1781_v28 = vpop.f32.mrf.mxu1  ;;  %v1597_v29 = vpack.c.bf16 %v984_v25, %v983_v23  ;;  %v1718_v33 = vadd.f32 %v1717_v27, %v1716_v59 }
 0x133   : > { %v1637_v30 = vpack.c.bf16 %v1192_v26, %v1191_v24  ;;  %v1719_v31 = vpop.f32.mrf.mxu0  ;;  %v1782_v34 = vadd.f32 %v1781_v28, %v1780_v22 }
 0x134   : > { %v1783_v32 = vpop.f32.mrf.mxu1  ;;  %1649 = vst [vmem:[%s2264_s13 + $0x30] sm:$0xff] %v1597_v29   ;;  %v985_v56 = vmul.f32 %v1718_v33, %v2258_v2 }
 0x135   : > { %1656 = vst [vmem:[%s2267_s11 + $0x30] sm:$0xff] %v1637_v30   ;;  %v1720_v35 = vpop.f32.mrf.mxu0  ;;  %v1193_v39 = vmul.f32 %v1782_v34, %v1172_v38 }
 0x136   : > { %v1784_v36 = vpop.f32.mrf.mxu1  ;;  %v1721_v62 = vadd.f32 %v1720_v35, %v1719_v31 }
 0x137   : > { %v1785_v37 = vadd.f32 %v1784_v36, %v1783_v32 }
 0x138   : > { %v986_v55 = vmul.f32 %v1721_v62, %v2256_v1 }
 0x139   : > { %v1194_v40 = vmul.f32 %v1785_v37, %v1177_v61 }
 0x13a   : > { %v1602_v41 = vpack.c.bf16 %v986_v55, %v985_v56 }
 0x13b   : > { %v1642_v42 = vpack.c.bf16 %v1194_v40, %v1193_v39 }
 0x13c   : > { %1650 = vst [vmem:[%s2264_s13 + $0x38] sm:$0xff] %v1602_v41  }
 0x13d   : > { %1657 = vst [vmem:[%s2267_s11 + $0x38] sm:$0xff] %v1642_v42  }
 0x13e   : > { %1904 = shalt.err (!%p1901_p3)
}
 0x13f   : > { %s1905_s13 = scalar_lea.hbm %s2300_s19, 1024  ;;  %s1909_s18 = scalar_lea.hbm %s2385_s5, 2048 }
 0x140   : > { %p1906_p4 = scmp.ne.s32.totalorder %s2300_s19, %s1905_s13  ;;  %p1910_p9 = scmp.lt.s32.totalorder %s2300_s19, %s2385_s5 }
 0x141   : > { %p1911_p10 = scmp.lt.s32.totalorder %s1909_s18, %s1905_s13 }
 0x142   : > { %p1907_p7 = pnand %p1906_p4, %p2061_p5 }
 0x143   : > { %p1912_p11 = por %p1911_p10, %p1910_p9 }
 0x144   : > { %p1908_p8 = pneg %p1907_p7 }
 0x146   : > { %p1913_p12 = pnand %p1912_p11, %p1908_p8 }
 0x148   : > { %1916 = shalt.err (!%p1913_p12)
}
 0x149   : > { %s1985_s9 = smov 64   ;;  %s1986_s10 = smov 4  }
 0x14a   : > { %1786 = dma.vmem_to_hbm [thread:$0]  (%p2061_p5), %s2302_s15, 1024, %s2300_s19, %s1276_s29, %s1985_s9, %s1985_s9, %s1986_s10  }
 0x14b   : > { %s1281_s12 = scalar_lea.sflag [#allocation5], %s2261_s20  ;;  %s1917_s17 = scalar_lea.vmem %s2309_s16, 1024 }
 0x14c   : > { %p1918_p13 = scmp.ne.s32.totalorder %s2309_s16, %s1917_s17  ;;  %s1987_s13 = smov [#allocation4]  }
 0x14d   : > { %s1921_s11 = sshll.u32 %s1987_s13, 4  ;;  %s1922_s11 = int_to_ptr.vmem [resolvable:$false] %s1921_s11 }
 0x14e   : > { %p1919_p0 = pnand %p1918_p13, %p2061_p5  ;;  %s1923_s14 = scalar_lea.vmem %s1922_s11, 2048 }
 0x14f   : > { %p1924_p2 = scmp.lt.s32.totalorder %s2309_s16, %s1922_s11  ;;  %p1925_p3 = scmp.lt.s32.totalorder %s1923_s14, %s1917_s17 }
 0x150   : > { %p1920_p1 = pneg %p1919_p0 }
 0x151   : > { %p1926_p4 = por %p1925_p3, %p1924_p2 }
 0x153   : > { %p1927_p7 = pnand %p1926_p4, %p1920_p1 }
 0x155   : > { %1930 = shalt.err (!%p1927_p7)
}
 0x156   : > { %s1931_s15 = scalar_lea.hbm %s2307_s28, 1024  ;;  %s1935_s29 = scalar_lea.hbm %s2386_s6, 2048 }
 0x157   : > { %p1932_p8 = scmp.ne.s32.totalorder %s2307_s28, %s1931_s15  ;;  %p1936_p11 = scmp.lt.s32.totalorder %s2307_s28, %s2386_s6 }
 0x158   : > { %p1937_p12 = scmp.lt.s32.totalorder %s1935_s29, %s1931_s15 }
 0x159   : > { %p1933_p9 = pnand %p1932_p8, %p2061_p5 }
 0x15a   : > { %p1938_p13 = por %p1937_p12, %p1936_p11 }
 0x15b   : > { %p1934_p10 = pneg %p1933_p9 }
 0x15d   : > { %p1939_p0 = pnand %p1938_p13, %p1934_p10 }
 0x15f   : > { %1942 = shalt.err (!%p1939_p0)
}
 0x160   : > { %1787 = dma.vmem_to_hbm [thread:$0]  (%p2061_p5), %s2309_s16, 1024, %s2307_s28, %s1281_s12, %s1985_s9, %s1985_s9, %s1986_s10  }
 0x161 PF: > { %p1797_p1 = scmp.ge.s32.totalorder %s1981_s24, 2  ;;  %s1325_s26 = sand.u32 1, %s1969_s21  }
 0x162   : > { %s1326_s17 = scalar_lea.sflag [#allocation3], %s1325_s26 }
 0x163   : > { %p1791_p2 = pnand %p1797_p1, %p2065_p6 }
 0x165   : > { %p1792_p3 = pneg %p1791_p2 }
 0x167   : > { %1960 = dma.done.wait (%p1792_p3), %s1326_s17, 1024  }
 0x168   : > { %1962 = vsyncadd (%p1792_p3), %s1326_s17, 4294966272  ;;  %s1335_s13 = scalar_lea.sflag [#allocation5], %s1325_s26 }
 0x169   : > { %1964 = dma.done.wait (%p1792_p3), %s1335_s13, 1024  }
 0x16a   : > { %1966 = vsyncadd (%p1792_p3), %s1335_s13, 4294966272  ;;  %p20_p5 = scmp.ge.s32.totalorder %s2048_s27, 4   ;;  %s2389_s21 = smov %s1973_s22 }
 0x16b   : > { %s2390_s22 = smov %s1977_s23  ;;  %s2391_s23 = smov %s2059_s30 }
 0x16c   : > { %s2392_s24 = smov %s2048_s27  ;;  %22 = sbr.rel (!%p20_p5) target bundleno = 5 (0x5), region = 98 }
 0x171   :  { %1340 = vsyncpa [#allocation3], 1 }
 0x172   :  { %1342 = vsyncpa [#allocation3 + $0x1], 1 }
 0x173   :  { %1343 = vsyncpa [#allocation5], 1 }
 0x174   :  { %1345 = vsyncpa [#allocation5 + $0x1], 1 }

</bundles_post_ra>
